<compile_context>
chip_gen: v6e
topology: v6e:2x2x1
jax: 0.10.0
libtpu: 0.0.40
codegen_flags: <defaults>
</compile_context>

<pallas_src>
import functools

import jax
import jax.numpy as jnp
from jax.experimental import pallas as pl
from jax.experimental.pallas import tpu as pltpu


# --------------------------------------------------------------------------- #
# Kernel
# --------------------------------------------------------------------------- #
def _mlp_kernel(x_ref, wg_ref, wu_ref, wd_ref, o_ref, acc_ref):
    # x_ref:   (tm, H)       VMEM  token tile (constant across j)
    # wg_ref:  (H, ti)       VMEM  gate-projection weight tile (scale folded in)
    # wu_ref:  (H, ti)       VMEM  up-projection weight tile
    # wd_ref:  (ti, H)       VMEM  down-projection weight tile (scales folded in)
    # o_ref:   (tm, H)       VMEM  output tile (resident across j)
    # acc_ref: (tm, H) f32   VMEM  accumulator scratch
    j = pl.program_id(1)

    @pl.when(j == 0)
    def _():
        acc_ref[...] = jnp.zeros_like(acc_ref)

    x = x_ref[...]
    gate = jnp.dot(x, wg_ref[...], preferred_element_type=jnp.float32)
    up = jnp.dot(x, wu_ref[...], preferred_element_type=jnp.float32)
    h = jax.nn.silu(gate) * up  # DeepSeek hidden_act == silu

    acc_ref[...] += jnp.dot(h.astype(wd_ref.dtype), wd_ref[...],
                            preferred_element_type=jnp.float32)

    @pl.when(j == pl.num_programs(1) - 1)
    def _():
        o_ref[...] = acc_ref[...].astype(o_ref.dtype)


# --------------------------------------------------------------------------- #
# Tiling / VMEM heuristics
# --------------------------------------------------------------------------- #
def _round_up(x, m):
    return ((x + m - 1) // m) * m


def _vmem_capacity_bytes():
    try:
        return int(pltpu.get_tpu_info().vmem_capacity_bytes)
    except Exception:
        return 64 * 1024 * 1024  # conservative: v7x per-TC VMEM


def _vmem_bytes_estimate(tm, ti, H, a_bytes, w_bytes):
    pipelined = 2 * (tm * H * a_bytes        # x tile (double buffered)
                     + 2 * H * ti * w_bytes  # gate + up weight tiles
                     + ti * H * w_bytes      # down weight tile
                     + tm * H * a_bytes)     # output tile
    acc = tm * H * 4                         # f32 accumulator scratch
    interm = 3 * tm * ti * 4                 # in-kernel f32 gate / up / h
    return pipelined + acc + interm


def _pick_tiles(T, H, I, a_bytes, w_bytes, vmem_cap):
    budget = vmem_cap - 8 * 1024 * 1024      # leave headroom for Mosaic scratch
    if vmem_cap <= 72 * 1024 * 1024:         # v7x: 64 MiB per TensorCore
        tm, ti = 384, 256
    else:                                    # v5e / v6e: 128 MiB
        tm, ti = 512, 512

    ti = min(ti, I)
    while I % ti != 0 and ti > 128:
        ti -= 128
    if I % ti != 0:
        ti = I

    # Decode-sized inputs: shrink the token tile instead of padding to prefill.
    tm = min(tm, _round_up(max(T, 8), 8))

    # Respect the real VMEM budget (shrink tm first, then ti).
    while _vmem_bytes_estimate(tm, ti, H, a_bytes, w_bytes) > budget and tm > 64:
        tm = max(64, tm // 2)
    while (_vmem_bytes_estimate(tm, ti, H, a_bytes, w_bytes) > budget
           and ti > 128 and ti % 2 == 0 and I % (ti // 2) == 0):
        ti //= 2
    return tm, ti


# --------------------------------------------------------------------------- #
# Load-time weight preparation (done ONCE, outside jit)
# --------------------------------------------------------------------------- #
def prepare_weights(gate_w, up_w, down_w, gate_scale, up_scale, down_scale):
    """nn.Linear weights ([out, in]) + scalar scale_inv buffers ->
    kernel layout with scales folded in.

    gate_w: [I, H], up_w: [I, H], down_w: [H, I]  ->  [H, I], [H, I], [I, H].
    The gate scale stays inside the nonlinearity, so it is folded into w_gate;
    the up and down scales commute through the linear down projection, so they
    are folded into w_down.
    """
    gate_scale = jnp.asarray(gate_scale, jnp.float32).reshape(())
    up_scale = jnp.asarray(up_scale, jnp.float32).reshape(())
    down_scale = jnp.asarray(down_scale, jnp.float32).reshape(())

    w_gate = (gate_w.T * gate_scale).astype(gate_w.dtype)          # [H, I]
    w_up = up_w.T                                                  # [H, I]
    w_down = (down_w.T * (up_scale * down_scale)).astype(down_w.dtype)  # [I, H]
    return w_gate, w_up, w_down


# --------------------------------------------------------------------------- #
# Forward pass
# --------------------------------------------------------------------------- #
@functools.partial(jax.jit, static_argnames=("tm", "ti", "vmem_limit"))
def _deepseek_mlp_impl(x, w_gate, w_up, w_down, *, tm, ti, vmem_limit):
    B, S, H = x.shape
    I = w_gate.shape[1]

    T = B * S
    n_i = pl.cdiv(T, tm)
    T_pad = n_i * tm
    nb = I // ti

    x2d = x.reshape(T, H)
    if T_pad != T:  # ragged token counts: zero-pad (silu(0)*0 == 0, harmless)
        x2d = jnp.pad(x2d, ((0, T_pad - T), (0, 0)))

    a_bytes = jnp.dtype(x.dtype).itemsize
    w_bytes = jnp.dtype(w_gate.dtype).itemsize
    cost = pl.CostEstimate(
        flops=6 * T_pad * H * I,
        transcendentals=T_pad * I,
        bytes_accessed=2 * T_pad * H * a_bytes + 3 * H * I * w_bytes * n_i,
    )

    out2d = pl.pallas_call(
        _mlp_kernel,
        out_shape=jax.ShapeDtypeStruct((T_pad, H), x.dtype),
        grid_spec=pltpu.PrefetchScalarGridSpec(
            num_scalar_prefetch=0,
            grid=(n_i, nb),
            in_specs=[
                pl.BlockSpec((tm, H), lambda i, j: (i, 0)),   # x tile
                pl.BlockSpec((H, ti), lambda i, j: (0, j)),   # gate weight tile
                pl.BlockSpec((H, ti), lambda i, j: (0, j)),   # up weight tile
                pl.BlockSpec((ti, H), lambda i, j: (j, 0)),   # down weight tile
            ],
            out_specs=pl.BlockSpec((tm, H), lambda i, j: (i, 0)),
            scratch_shapes=[pltpu.VMEM((tm, H), jnp.float32)],
        ),
        compiler_params=pltpu.CompilerParams(
            dimension_semantics=("parallel", "arbitrary"),
            vmem_limit_bytes=vmem_limit,
        ),
        cost_estimate=cost,
    )(x2d, w_gate, w_up, w_down)

    return out2d[:T].reshape(B, S, H)


def deepseek_mlp(x, w_gate, w_up, w_down, *, tm=None, ti=None):
    """x: [B, S, H]; w_gate/w_up: [H, I]; w_down: [I, H] (scales pre-folded)."""
    B, S, H = x.shape
    I = w_gate.shape[1]
    T = B * S

    a_bytes = jnp.dtype(x.dtype).itemsize
    w_bytes = jnp.dtype(w_gate.dtype).itemsize
    vmem_cap = _vmem_capacity_bytes()

    auto_tm, auto_ti = _pick_tiles(T, H, I, a_bytes, w_bytes, vmem_cap)
    tm = auto_tm if tm is None else max(8, _round_up(min(tm, _round_up(T, 8)), 8))
    ti = auto_ti if ti is None else min(ti, I)
    assert I % ti == 0, "intermediate size must be divisible by ti"

    budget = max(32 * 1024 * 1024, vmem_cap - 8 * 1024 * 1024)
    est = _vmem_bytes_estimate(tm, ti, H, a_bytes, w_bytes)
    vmem_limit = int(min(budget, max(int(est * 1.3) + (8 << 20), 32 << 20)))

    return _deepseek_mlp_impl(x, w_gate, w_up, w_down,
                              tm=tm, ti=ti, vmem_limit=vmem_limit)


# --------------------------------------------------------------------------- #
# Reference + self-test
# --------------------------------------------------------------------------- #
def _reference(x, gate_w, up_w, down_w, scales):
    # Mirrors the PyTorch module exactly (nn.Linear layout [out, in]).
    gate = jnp.einsum("bsh,ih->bsi", x, gate_w) * scales[0]
    up = jnp.einsum("bsh,ih->bsi", x, up_w) * scales[1]
    return jnp.einsum("bsi,hi->bsh", jax.nn.silu(gate) * up, down_w) * scales[2]


if __name__ == "__main__":
    # Small config: hidden=128, intermediate=256, batch=2, seq=60 (120 tokens,
    # ragged vs. the token tile to exercise the padding path).
    B, S, H, I = 2, 60, 128, 256

    key = jax.random.PRNGKey(0)
    kx, kg, ku, kd = jax.random.split(key, 4)

    x = jax.random.normal(kx, (B, S, H), dtype=jnp.float32)
    # nn.Linear weights are [out_features, in_features].
    gate_w = jax.random.normal(kg, (I, H), dtype=jnp.float32) * 0.02
    up_w = jax.random.normal(ku, (I, H), dtype=jnp.float32) * 0.02
    down_w = jax.random.normal(kd, (H, I), dtype=jnp.float32) * 0.02
    # Module initializes the scale_inv buffers to ones; use non-trivial values
    # here to exercise the load-time scale folding.
    scales = jnp.array([1.5, 0.75, 2.0], dtype=jnp.float32)

    # Load-time prep (done once, outside jit): transpose + fold scales.
    w_gate, w_up, w_down = prepare_weights(
        gate_w, up_w, down_w, scales[0], scales[1], scales[2])

    # tm=64 -> 2 token tiles (padding + 'parallel' axis exercised);
    # ti=128 -> 2 intermediate tiles (streamed accumulation exercised).
    out = deepseek_mlp(x, w_gate, w_up, w_down, tm=64, ti=128)
    out = jax.block_until_ready(out)

    ref = _reference(x, gate_w, up_w, down_w, scales)
    assert out.shape == (B, S, H)
    assert jnp.allclose(out, ref, atol=1e-4, rtol=1e-4), "mismatch vs reference"

    # Also exercise the auto tile-selection (decode-sized tm clamp) path.
    out_auto = jax.block_until_ready(deepseek_mlp(x, w_gate, w_up, w_down))
    assert jnp.allclose(out_auto, ref, atol=1e-4, rtol=1e-4), "auto-tile mismatch"

    print("KERNEL_OK")
</pallas_src>

<mosaic_0001>
module attributes {stable_mosaic.version = 11 : i64} {
  func.func @_mlp_kernel(%arg0: i32, %arg1: i32, %arg2: memref<64x128xf32, #tpu.memory_space<vmem>>, %arg3: memref<128x128xf32, #tpu.memory_space<vmem>>, %arg4: memref<128x128xf32, #tpu.memory_space<vmem>>, %arg5: memref<128x128xf32, #tpu.memory_space<vmem>>, %arg6: memref<64x128xf32, #tpu.memory_space<vmem>>, %arg7: memref<64x128xf32, #tpu.memory_space<vmem>>) attributes {dimension_semantics = [#tpu.dimension_semantics<parallel>, #tpu.dimension_semantics<arbitrary>], iteration_bounds = array<i64: 2, 2>, scalar_prefetch = 0 : i64, scratch_operands = 1 : i64, tpu.core_type = #tpu.core_type<tc>, window_params = [{transform_indices = @transform_0, window_bounds = array<i64: 64, 128>}, {transform_indices = @transform_1, window_bounds = array<i64: 128, 128>}, {transform_indices = @transform_2, window_bounds = array<i64: 128, 128>}, {transform_indices = @transform_3, window_bounds = array<i64: 128, 128>}, {transform_indices = @transform_4, window_bounds = array<i64: 64, 128>}]} {
    %c0_i32 = arith.constant 0 : i32
    %0 = arith.cmpi eq, %arg1, %c0_i32 : i32
    %1 = arith.extui %0 : i1 to i32
    %c0_i32_0 = arith.constant 0 : i32
    %2 = arith.cmpi ne, %1, %c0_i32_0 : i32
    scf.if %2 {
      %cst_16 = arith.constant 0.000000e+00 : f32
      %23 = vector.broadcast %cst_16 : f32 to vector<64x128xf32>
      %c0_17 = arith.constant 0 : index
      %c0_18 = arith.constant 0 : index
      %24 = vector.load %arg7[%c0_17, %c0_18] : memref<64x128xf32, #tpu.memory_space<vmem>>, vector<64x128xf32>
      tpu.vector_store %arg7[%c0_17, %c0_18], %23 {strides = array<i32>} : memref<64x128xf32, #tpu.memory_space<vmem>>, vector<64x128xf32>,
    } else {
    }
    %c0 = arith.constant 0 : index
    %c0_1 = arith.constant 0 : index
    %3 = vector.load %arg2[%c0, %c0_1] : memref<64x128xf32, #tpu.memory_space<vmem>>, vector<64x128xf32>
    %c0_2 = arith.constant 0 : index
    %c0_3 = arith.constant 0 : index
    %4 = vector.load %arg3[%c0_2, %c0_3] : memref<128x128xf32, #tpu.memory_space<vmem>>, vector<128x128xf32>
    %cst = arith.constant dense<0.000000e+00> : vector<64x128xf32>
    %5 = tpu.matmul %3, %4, %cst {dimension_numbers = #tpu.dot_dimension_numbers<[1], [0], [0], [1], [0, 0, 1, 1], [], []>} : vector<64x128xf32>, vector<128x128xf32>, vector<64x128xf32> -> vector<64x128xf32>
    %c0_4 = arith.constant 0 : index
    %c0_5 = arith.constant 0 : index
    %6 = vector.load %arg4[%c0_4, %c0_5] : memref<128x128xf32, #tpu.memory_space<vmem>>, vector<128x128xf32>
    %cst_6 = arith.constant dense<0.000000e+00> : vector<64x128xf32>
    %7 = tpu.matmul %3, %6, %cst_6 {dimension_numbers = #tpu.dot_dimension_numbers<[1], [0], [0], [1], [0, 0, 1, 1], [], []>} : vector<64x128xf32>, vector<128x128xf32>, vector<64x128xf32> -> vector<64x128xf32>
    %8 = arith.negf %5 : vector<64x128xf32>
    %9 = math.exp %8 : vector<64x128xf32>
    %cst_7 = arith.constant 1.000000e+00 : f32
    %10 = vector.broadcast %cst_7 : f32 to vector<64x128xf32>
    %11 = arith.addf %10, %9 : vector<64x128xf32>
    %12 = arith.divf %10, %11 : vector<64x128xf32>
    %13 = arith.mulf %5, %12 : vector<64x128xf32>
    %14 = arith.mulf %13, %7 : vector<64x128xf32>
    %c0_8 = arith.constant 0 : index
    %c0_9 = arith.constant 0 : index
    %15 = vector.load %arg7[%c0_8, %c0_9] : memref<64x128xf32, #tpu.memory_space<vmem>>, vector<64x128xf32>
    %c0_10 = arith.constant 0 : index
    %c0_11 = arith.constant 0 : index
    %16 = vector.load %arg5[%c0_10, %c0_11] : memref<128x128xf32, #tpu.memory_space<vmem>>, vector<128x128xf32>
    %cst_12 = arith.constant dense<0.000000e+00> : vector<64x128xf32>
    %17 = tpu.matmul %14, %16, %cst_12 {dimension_numbers = #tpu.dot_dimension_numbers<[1], [0], [0], [1], [0, 0, 1, 1], [], []>} : vector<64x128xf32>, vector<128x128xf32>, vector<64x128xf32> -> vector<64x128xf32>
    %18 = arith.addf %15, %17 : vector<64x128xf32>
    %c0_13 = arith.constant 0 : index
    %c0_14 = arith.constant 0 : index
    %19 = vector.load %arg7[%c0_13, %c0_14] : memref<64x128xf32, #tpu.memory_space<vmem>>, vector<64x128xf32>
    tpu.vector_store %arg7[%c0_13, %c0_14], %18 {strides = array<i32>} : memref<64x128xf32, #tpu.memory_space<vmem>>, vector<64x128xf32>,
    %c1_i32 = arith.constant 1 : i32
    %20 = arith.cmpi eq, %arg1, %c1_i32 : i32
    %21 = arith.extui %20 : i1 to i32
    %c0_i32_15 = arith.constant 0 : i32
    %22 = arith.cmpi ne, %21, %c0_i32_15 : i32
    scf.if %22 {
      %c0_16 = arith.constant 0 : index
      %c0_17 = arith.constant 0 : index
      %23 = vector.load %arg7[%c0_16, %c0_17] : memref<64x128xf32, #tpu.memory_space<vmem>>, vector<64x128xf32>
      %c0_18 = arith.constant 0 : index
      %c0_19 = arith.constant 0 : index
      %24 = vector.load %arg6[%c0_18, %c0_19] : memref<64x128xf32, #tpu.memory_space<vmem>>, vector<64x128xf32>
      tpu.vector_store %arg6[%c0_18, %c0_19], %23 {strides = array<i32>} : memref<64x128xf32, #tpu.memory_space<vmem>>, vector<64x128xf32>,
    } else {
    }
    return
  }
  func.func @transform_0(%arg0: i32, %arg1: i32) -> (i32, i32) {
    %c0_i32 = arith.constant 0 : i32
    %c0_i32_0 = arith.constant 0 : i32
    return %arg0, %c0_i32 : i32, i32
  }
  func.func @transform_1(%arg0: i32, %arg1: i32) -> (i32, i32) {
    %c0_i32 = arith.constant 0 : i32
    %c0_i32_0 = arith.constant 0 : i32
    return %c0_i32, %arg1 : i32, i32
  }
  func.func @transform_2(%arg0: i32, %arg1: i32) -> (i32, i32) {
    %c0_i32 = arith.constant 0 : i32
    %c0_i32_0 = arith.constant 0 : i32
    return %c0_i32, %arg1 : i32, i32
  }
  func.func @transform_3(%arg0: i32, %arg1: i32) -> (i32, i32) {
    %c0_i32 = arith.constant 0 : i32
    %c0_i32_0 = arith.constant 0 : i32
    return %arg1, %c0_i32 : i32, i32
  }
  func.func @transform_4(%arg0: i32, %arg1: i32) -> (i32, i32) {
    %c0_i32 = arith.constant 0 : i32
    %c0_i32_0 = arith.constant 0 : i32
    return %arg0, %c0_i32 : i32, i32
  }
}

</mosaic_0001>

<bundles_post_ra>
// kernel: _deepseek_mlp_impl.1
= control target key start
LH: loop header
LB: loop body
LE: loop exit
PB: predicated region body
PF: predicated region fallthrough
CT: control target
= control target key end

     0   :  { %9 = vsyncpa [#allocation6], 0  ;;  %s1836_s0 = inlined_call_operand.vmem [shape: f32[128,128], index: 0, kind: input, shape index: {}]   ;;  %s1837_s1 = inlined_call_operand.vmem [shape: f32[128,256], index: 1, kind: input, shape index: {}]   ;;  %s1838_s2 = inlined_call_operand.vmem [shape: f32[128,256], index: 2, kind: input, shape index: {}]   ;;  %s1839_s3 = inlined_call_operand.hbm [shape: f32[256,128], index: 3, kind: input, shape index: {}]   ;;  %s1840_s4 = inlined_call_operand.vmem [shape: f32[128,128], index: 4, kind: output, shape index: {}]  }
   0x1   :  { %11 = vsyncpa [#allocation6 + $0x1], 0  ;;  %s1594_s15 = smov 0   ;;  %s1596_s16 = smov 0  }
   0x2   :  { %s1598_s17 = smov 0   ;;  %s1600_s18 = smov 0  }
   0x3   :  { %s1602_s19 = smov 0   ;;  %s1604_s20 = smov 0  }
   0x4   :  { %s1606_s21 = smov 0   ;;  %s1608_s22 = smov 0  }
   0x5 LB: > { %s1102_s23 = sadd.s32 4294967295, %s1563_s22   ;;  %s26_s24 = sadd.s32 1, %s1555_s20  ;;  %s1563_s22 = sphi %s1608_s22, %s17_s22   ;;  %s1559_s21 = sphi %s1606_s21, %s1849_s21   ;;  %s1555_s20 = sphi %s1604_s20, %s1848_s20   ;;  %s1551_s19 = sphi %s1602_s19, %s1847_s19   ;;  %s1547_s18 = sphi %s1600_s18, %s1846_s18   ;;  %s1543_s17 = sphi %s1598_s17, %s1845_s17   ;;  %s1539_s16 = sphi %s1596_s16, %s1844_s16   ;;  %s1535_s15 = sphi %s1594_s15, %s1843_s15  }
   0x6   : > { %p27_p0 = scmp.ge.s32.totalorder %s26_s24, 2  ;;  %s29_s25 = sadd.s32 1, %s1559_s21 }
   0x7   : > { %s62_s26 = sadd.s32 1, %s1543_s17  ;;  %p69_p1 = scmp.ne.s32.totalorder %s1543_s17, %s1539_s16 }
   0x8   : > { %s1851_s24 = smov (%p27_p0, %s26_s24), 0  ;;  %s1853_s25 = smov (!%p27_p0, %s29_s25), %s1559_s21 }
   0x9   : > { %s59_s27 = ssub.s32 %s1555_s20, %s1851_s24  ;;  %p70_p2 = scmp.eq.s32.totalorder %s1563_s22, 0 }
   0xa   : > { %p31_p3 = scmp.ge.s32.totalorder %s1853_s25, 2  ;;  %p60_p4 = scmp.eq.s32.totalorder %s59_s27, 0 }
   0xb   : > { %p1644_p5 = por %p70_p2, %p69_p1  ;;  %p127_p6 = scmp.ne.s32.totalorder %s1539_s16, %s1535_s15 }
   0xc   : > { %s1855_s25 = smov (%p31_p3, %s1853_s25), 0  ;;  %p128_p7 = scmp.eq.s32.totalorder %s1102_s23, 0 }
   0xd   : > { %s1652_s29 = scalar_select %p60_p4, %s1543_s17, %s62_s26  }
   0xe   : > { %p1654_p8 = por %p128_p7, %p127_p6  ;;  %p1105_p9 = scmp.ge.s32.totalorder %s1563_s22, 4 }
  0x10   : > { %173 = sbr.rel (%p1105_p9) target bundleno = 61 (0x3d), region = 16 }
  0x15   : > { %185 = sbr.rel (!%p1644_p5) target bundleno = 33 (0x21), region = 24  ;;  %s187_s5 = sand.u32 (%p1644_p5), 1, %s1543_s17  }
  0x16   : > { %s1107_s6 = sshll.u32 (%p1644_p5), %s1555_s20, 3  ;;  %s1106_s7 = sshll.u32 (%p1644_p5), %s187_s5, 7 }
  0x17   : > { %s1666_s10 = scalar_lea.vmem (%p1644_p5), %s1837_s1, %s1107_s6  ;;  %s189_s11 = scalar_lea.vmem (%p1644_p5), [#allocation3], %s1106_s7 }
  0x18   : > { %v250_v0 = vld [vmem:[%s1666_s10] sm:$0xff] (%p1644_p5)  ;;  %v252_v1 = vld [vmem:[%s1666_s10 + $0x10] sm:$0xff] (%p1644_p5) }
  0x19   : > { %v254_v2 = vld [vmem:[%s1666_s10 + $0x20] sm:$0xff] (%p1644_p5)  ;;  %251 = vst [vmem:[%s189_s11] sm:$0xff] (%p1644_p5), %v250_v0  ;;  %253 = vst [vmem:[%s189_s11 + $0x8] sm:$0xff] (%p1644_p5), %v252_v1  ;;  %v256_v3 = vld [vmem:[%s1666_s10 + $0x30] sm:$0xff] (%p1644_p5) }
  0x1a   : > { %255 = vst [vmem:[%s189_s11 + $0x10] sm:$0xff] %v254_v2  ;;  %v258_v4 = vld [vmem:[%s1666_s10 + $0x40] sm:$0xff]  ;;  %v260_v5 = vld [vmem:[%s1666_s10 + $0x50] sm:$0xff]  ;;  %257 = vst [vmem:[%s189_s11 + $0x18] sm:$0xff] %v256_v3 }
  0x1b   : > { %259 = vst [vmem:[%s189_s11 + $0x20] sm:$0xff] %v258_v4  ;;  %261 = vst [vmem:[%s189_s11 + $0x28] sm:$0xff] %v260_v5  ;;  %v262_v6 = vld [vmem:[%s1666_s10 + $0x60] sm:$0xff]  ;;  %v264_v7 = vld [vmem:[%s1666_s10 + $0x70] sm:$0xff] }
  0x1c   : > { %v266_v8 = vld [vmem:[%s1666_s10 + $0x80] sm:$0xff]  ;;  %263 = vst [vmem:[%s189_s11 + $0x30] sm:$0xff] %v262_v6  ;;  %265 = vst [vmem:[%s189_s11 + $0x38] sm:$0xff] %v264_v7  ;;  %v268_v9 = vld [vmem:[%s1666_s10 + $0x90] sm:$0xff] }
  0x1d   : > { %267 = vst [vmem:[%s189_s11 + $0x40] sm:$0xff] %v266_v8  ;;  %v270_v10 = vld [vmem:[%s1666_s10 + $0xa0] sm:$0xff]  ;;  %v272_v11 = vld [vmem:[%s1666_s10 + $0xb0] sm:$0xff]  ;;  %269 = vst [vmem:[%s189_s11 + $0x48] sm:$0xff] %v268_v9 }
  0x1e   : > { %271 = vst [vmem:[%s189_s11 + $0x50] sm:$0xff] %v270_v10  ;;  %273 = vst [vmem:[%s189_s11 + $0x58] sm:$0xff] %v272_v11  ;;  %v274_v12 = vld [vmem:[%s1666_s10 + $0xc0] sm:$0xff]  ;;  %v276_v13 = vld [vmem:[%s1666_s10 + $0xd0] sm:$0xff] }
  0x1f   : > { %v278_v14 = vld [vmem:[%s1666_s10 + $0xe0] sm:$0xff]  ;;  %275 = vst [vmem:[%s189_s11 + $0x60] sm:$0xff] %v274_v12  ;;  %277 = vst [vmem:[%s189_s11 + $0x68] sm:$0xff] %v276_v13  ;;  %v280_v15 = vld [vmem:[%s1666_s10 + $0xf0] sm:$0xff] }
  0x20   : > { %279 = vst [vmem:[%s189_s11 + $0x70] sm:$0xff] %v278_v14  ;;  %281 = vst [vmem:[%s189_s11 + $0x78] sm:$0xff] %v280_v15 }
  0x21 PF: > { %287 = sbr.rel (!%p1644_p5) target bundleno = 45 (0x2d), region = 62  ;;  %s289_s12 = sand.u32 (%p1644_p5), 1, %s1543_s17  }
  0x22   : > { %s1109_s13 = sshll.u32 (%p1644_p5), %s1555_s20, 3  ;;  %s1108_s14 = sshll.u32 (%p1644_p5), %s289_s12, 7 }
  0x23   : > { %s1691_s26 = scalar_lea.vmem (%p1644_p5), %s1838_s2, %s1109_s13  ;;  %s291_s27 = scalar_lea.vmem (%p1644_p5), [#allocation4], %s1108_s14 }
  0x24   : > { %v352_v16 = vld [vmem:[%s1691_s26] sm:$0xff] (%p1644_p5)  ;;  %v354_v17 = vld [vmem:[%s1691_s26 + $0x10] sm:$0xff] (%p1644_p5) }
  0x25   : > { %v356_v18 = vld [vmem:[%s1691_s26 + $0x20] sm:$0xff] (%p1644_p5)  ;;  %353 = vst [vmem:[%s291_s27] sm:$0xff] (%p1644_p5), %v352_v16  ;;  %355 = vst [vmem:[%s291_s27 + $0x8] sm:$0xff] (%p1644_p5), %v354_v17  ;;  %v358_v19 = vld [vmem:[%s1691_s26 + $0x30] sm:$0xff] (%p1644_p5) }
  0x26   : > { %357 = vst [vmem:[%s291_s27 + $0x10] sm:$0xff] %v356_v18  ;;  %v360_v20 = vld [vmem:[%s1691_s26 + $0x40] sm:$0xff]  ;;  %v362_v21 = vld [vmem:[%s1691_s26 + $0x50] sm:$0xff]  ;;  %359 = vst [vmem:[%s291_s27 + $0x18] sm:$0xff] %v358_v19 }
  0x27   : > { %361 = vst [vmem:[%s291_s27 + $0x20] sm:$0xff] %v360_v20  ;;  %363 = vst [vmem:[%s291_s27 + $0x28] sm:$0xff] %v362_v21  ;;  %v364_v22 = vld [vmem:[%s1691_s26 + $0x60] sm:$0xff]  ;;  %v366_v23 = vld [vmem:[%s1691_s26 + $0x70] sm:$0xff] }
  0x28   : > { %v368_v24 = vld [vmem:[%s1691_s26 + $0x80] sm:$0xff]  ;;  %365 = vst [vmem:[%s291_s27 + $0x30] sm:$0xff] %v364_v22  ;;  %367 = vst [vmem:[%s291_s27 + $0x38] sm:$0xff] %v366_v23  ;;  %v370_v25 = vld [vmem:[%s1691_s26 + $0x90] sm:$0xff] }
  0x29   : > { %369 = vst [vmem:[%s291_s27 + $0x40] sm:$0xff] %v368_v24  ;;  %v372_v26 = vld [vmem:[%s1691_s26 + $0xa0] sm:$0xff]  ;;  %v374_v27 = vld [vmem:[%s1691_s26 + $0xb0] sm:$0xff]  ;;  %371 = vst [vmem:[%s291_s27 + $0x48] sm:$0xff] %v370_v25 }
  0x2a   : > { %373 = vst [vmem:[%s291_s27 + $0x50] sm:$0xff] %v372_v26  ;;  %375 = vst [vmem:[%s291_s27 + $0x58] sm:$0xff] %v374_v27  ;;  %v376_v28 = vld [vmem:[%s1691_s26 + $0xc0] sm:$0xff]  ;;  %v378_v29 = vld [vmem:[%s1691_s26 + $0xd0] sm:$0xff] }
  0x2b   : > { %v380_v30 = vld [vmem:[%s1691_s26 + $0xe0] sm:$0xff]  ;;  %377 = vst [vmem:[%s291_s27 + $0x60] sm:$0xff] %v376_v28  ;;  %379 = vst [vmem:[%s291_s27 + $0x68] sm:$0xff] %v378_v29  ;;  %v382_v31 = vld [vmem:[%s1691_s26 + $0xf0] sm:$0xff] }
  0x2c   : > { %381 = vst [vmem:[%s291_s27 + $0x70] sm:$0xff] %v380_v30  ;;  %383 = vst [vmem:[%s291_s27 + $0x78] sm:$0xff] %v382_v31 }
  0x2d PF: > { %s390_s5 = sand.u32 1, %s1543_s17   ;;  %s1133_s6 = sshll.u32 %s1555_s20, 11 }
  0x2e   : > { %s1110_s7 = sshll.u32 %s390_s5, 7  ;;  %s400_s10 = scalar_lea.hbm %s1839_s3, %s1133_s6 }
  0x2f   : > { %s394_s11 = scalar_lea.vmem [#allocation5], %s1110_s7  ;;  %s391_s13 = scalar_lea.sflag [#allocation6], %s390_s5 }
  0x30   : > { %s401_s12 = sshll.u32 %s394_s11, 4  ;;  %s1565_s15 = smov [#allocation5]   ;;  %s402_s12 = int_to_ptr.vmem [resolvable:$true] %s401_s12 }
  0x31   : > { %s1483_s14 = scalar_lea.vmem %s402_s12, 2048  ;;  %s1487_s23 = sshll.u32 %s1565_s15, 4  ;;  %s1488_s23 = int_to_ptr.vmem [resolvable:$false] %s1487_s23 }
  0x32   : > { %p1484_p10 = scmp.ne.s32.totalorder %s402_s12, %s1483_s14  ;;  %s1489_s26 = scalar_lea.vmem %s1488_s23, 4096 }
  0x33   : > { %p1490_p13 = scmp.lt.s32.totalorder %s402_s12, %s1488_s23  ;;  %p1491_p0 = scmp.lt.s32.totalorder %s1489_s26, %s1483_s14 }
  0x34   : > { %p1485_p11 = pnand %p1484_p10, %p1644_p5 }
  0x35   : > { %p1492_p1 = por %p1491_p0, %p1490_p13 }
  0x36   : > { %p1486_p12 = pneg %p1485_p11 }
  0x38   : > { %p1493_p2 = pnand %p1492_p1, %p1486_p12 }
  0x3a   : > { %1496 = shalt.err (!%p1493_p2)
}
  0x3b   : > { %s1566_s27 = smov 128   ;;  %s1567_s6 = smov 8  }
  0x3c   : > { %1370 = dma.hbm_to_vmem [thread:$0]  (%p1644_p5), %s400_s10, 2048, %s402_s12, %s391_s13, %s1566_s27, %s1566_s27, %s1567_s6  }
  0x3d PF: > { %p1113_p3 = scmp.ge.s32.totalorder %s1563_s22, 1  ;;  %p409_p4 = scmp.lt.s32.totalorder %s1563_s22, 5 }
  0x3f   : > { %p410_p6 = pnand %p1113_p3, %p409_p4 }
  0x40   : > { %s416_s5 = sand.u32 (!%p410_p6), 1, %s1539_s16  }
  0x41   : > { %413 = sbr.rel (%p410_p6) target bundleno = 566 (0x236), region = 104  ;;  %s1114_s7 = sshll.u32 (!%p410_p6), %s416_s5, 7 }
  0x42   : > { %s1721_s8 = scalar_lea.vmem (!%p410_p6), [#allocation3], %s1114_s7  ;;  %s1723_s9 = scalar_lea.vmem (!%p410_p6), [#allocation4], %s1114_s7 }
  0x43   : > { %s430_s11 = scalar_lea.sflag (!%p410_p6), [#allocation6], %s416_s5  ;;  %s1725_s14 = scalar_lea.vmem (!%p410_p6), [#allocation5], %s1114_s7 }
  0x46   : > { %1530 = dma.done.wait (%p1654_p8), %s430_s11, 2048  }
  0x47   : > { %1532 = vsyncadd (%p1654_p8), %s430_s11, 4294965248  ;;  %s1117_s28 = sshll.u32 %s1551_s19, 3  ;;  %p1121_p7 = scmp.ne.s32.totalorder %s1547_s18, 0 }
  0x48   : > { %p472_p5 = scmp.lt.s32.totalorder %s1117_s28, 15 }
  0x49   : > { %487 = sbr.rel (%p1121_p7) target bundleno = 83 (0x53), region = 120 }
  0x4a   : > { %s1857_s28 = smov (!%p472_p5, %s1117_s28), 15 }
  0x4b   : > { %s1118_s10 = sshll.u32 %s1857_s28, 3 }
  0x4c   : > { %s1735_s15 = scalar_lea.vmem %s1836_s0, %s1118_s10  ;;  %s1740_s27 = scalar_lea.vmem %s1840_s4, %s1118_s10 }
  0x4e   : > { %v1568_v32 = vmov 0.0  }
  0x4f   : > { %488 = vst [vmem:[#allocation2 + $0x30] sm:$0xff] %v1568_v32  ;;  %489 = vst [vmem:[#allocation2] sm:$0xff] %v1568_v32 }
  0x50   : > { %490 = vst [vmem:[#allocation2 + $0x18] sm:$0xff] %v1568_v32  ;;  %491 = vst [vmem:[#allocation2 + $0x10] sm:$0xff] %v1568_v32 }
  0x51   : > { %492 = vst [vmem:[#allocation2 + $0x8] sm:$0xff] %v1568_v32  ;;  %493 = vst [vmem:[#allocation2 + $0x20] sm:$0xff] %v1568_v32 }
  0x52   : > { %494 = vst [vmem:[#allocation2 + $0x28] sm:$0xff] %v1568_v32  ;;  %495 = vst [vmem:[#allocation2 + $0x38] sm:$0xff] %v1568_v32 }
  0x53 PF: > { %v519_v33 = vld [vmem:[%s1721_s8 + $0x78] sm:$0xff]  ;;  %v518_v34 = vld [vmem:[%s1721_s8 + $0x70] sm:$0xff]  ;;  %v517_v35 = vld [vmem:[%s1721_s8 + $0x68] sm:$0xff]  ;;  %p1130_p8 = scmp.ne.s32.totalorder %s1547_s18, 1 }
  0x54   : > { %1206 = vmatprep.subr.mxu0 %v519_v33  ;;  %v516_v36 = vld [vmem:[%s1721_s8 + $0x60] sm:$0xff]  ;;  %v515_v38 = vld [vmem:[%s1721_s8 + $0x58] sm:$0xff]  ;;  %v639_v40 = vld [vmem:[%s1723_s9 + $0x70] sm:$0xff] }
  0x55   : > { %1207 = vmatpush3.msra.mxu0 %v519_v33  ;;  %v1748_v37 = vld [vmem:[%s1735_s15] sm:$0xff]  ;;  %v640_v39 = vld [vmem:[%s1723_s9 + $0x78] sm:$0xff]  ;;  %v514_v41 = vld [vmem:[%s1721_s8 + $0x50] sm:$0xff] }
  0x56   : > { %1208 = vmatprep.subr.mxu0 %v518_v34  ;;  %1238 = vmatprep.mubr.f32.mxu0 %v1748_v37  ;;  %v638_v42 = vld [vmem:[%s1723_s9 + $0x68] sm:$0xff]  ;;  %v637_v44 = vld [vmem:[%s1723_s9 + $0x60] sm:$0xff]  ;;  %v636_v46 = vld [vmem:[%s1723_s9 + $0x58] sm:$0xff] }
  0x57   : > { %1209 = vmatpush3.msra.mxu0 %v518_v34  ;;  %1250 = vmatprep.subr.mxu1 %v640_v39  ;;  %v513_v43 = vld [vmem:[%s1721_s8 + $0x48] sm:$0xff]  ;;  %v512_v45 = vld [vmem:[%s1721_s8 + $0x40] sm:$0xff]  ;;  %v511_v47 = vld [vmem:[%s1721_s8 + $0x38] sm:$0xff] }
  0x58   : > { %1210 = vmatprep.subr.mxu0 %v517_v35  ;;  %1251 = vmatpush3.msra.mxu1 %v640_v39  ;;  %v635_v48 = vld [vmem:[%s1723_s9 + $0x50] sm:$0xff]  ;;  %v634_v50 = vld [vmem:[%s1723_s9 + $0x48] sm:$0xff]  ;;  %v633_v52 = vld [vmem:[%s1723_s9 + $0x40] sm:$0xff] }
  0x59   : > { %1211 = vmatpush3.msra.mxu0 %v517_v35  ;;  %1252 = vmatprep.subr.mxu1 %v639_v40  ;;  %v510_v49 = vld [vmem:[%s1721_s8 + $0x30] sm:$0xff]  ;;  %v509_v51 = vld [vmem:[%s1721_s8 + $0x28] sm:$0xff]  ;;  %v508_v53 = vld [vmem:[%s1721_s8 + $0x20] sm:$0xff] }
  0x5a   : > { %1212 = vmatprep.subr.mxu0 %v516_v36  ;;  %1253 = vmatpush3.msra.mxu1 %v639_v40  ;;  %v632_v54 = vld [vmem:[%s1723_s9 + $0x38] sm:$0xff]  ;;  %v631_v56 = vld [vmem:[%s1723_s9 + $0x30] sm:$0xff]  ;;  %v630_v58 = vld [vmem:[%s1723_s9 + $0x28] sm:$0xff] }
  0x5b   : > { %1213 = vmatpush3.msra.mxu0 %v516_v36  ;;  %1254 = vmatprep.subr.mxu1 %v638_v42  ;;  %v507_v55 = vld [vmem:[%s1721_s8 + $0x18] sm:$0xff]  ;;  %v506_v57 = vld [vmem:[%s1721_s8 + $0x10] sm:$0xff]  ;;  %v505_v59 = vld [vmem:[%s1721_s8 + $0x8] sm:$0xff] }
  0x5c   : > { %1214 = vmatprep.subr.mxu0 %v515_v38  ;;  %1255 = vmatpush3.msra.mxu1 %v638_v42  ;;  %v629_v60 = vld [vmem:[%s1723_s9 + $0x20] sm:$0xff]  ;;  %v628_v62 = vld [vmem:[%s1723_s9 + $0x18] sm:$0xff]  ;;  %v497_v63 = vld [vmem:[%s1735_s15 + $0x8] sm:$0xff] }
  0x5d   : > { %1215 = vmatpush3.msra.mxu0 %v515_v38  ;;  %1256 = vmatprep.subr.mxu1 %v637_v44  ;;  %v504_v61 = vld [vmem:[%s1721_s8] sm:$0xff]  ;;  %v627_v0 = vld [vmem:[%s1723_s9 + $0x10] sm:$0xff]  ;;  %v626_v2 = vld [vmem:[%s1723_s9 + $0x8] sm:$0xff] }
  0x5e   : > { %1216 = vmatprep.subr.mxu0 %v514_v41  ;;  %1257 = vmatpush3.msra.mxu1 %v637_v44  ;;  %v498_v1 = vld [vmem:[%s1735_s15 + $0x10] sm:$0xff]  ;;  %v499_v3 = vld [vmem:[%s1735_s15 + $0x18] sm:$0xff]  ;;  %v625_v4 = vld [vmem:[%s1723_s9] sm:$0xff] }
  0x5f   : > { %1217 = vmatpush3.msra.mxu0 %v514_v41  ;;  %1258 = vmatprep.subr.mxu1 %v636_v46  ;;  %v500_v5 = vld [vmem:[%s1735_s15 + $0x20] sm:$0xff]  ;;  %v501_v6 = vld [vmem:[%s1735_s15 + $0x28] sm:$0xff]  ;;  %v502_v7 = vld [vmem:[%s1735_s15 + $0x30] sm:$0xff] }
  0x60   : > { %1218 = vmatprep.subr.mxu0 %v513_v43  ;;  %1259 = vmatpush3.msra.mxu1 %v636_v46  ;;  %v503_v8 = vld [vmem:[%s1735_s15 + $0x38] sm:$0xff]  ;;  %v832_v10 = vld [vmem:[%s1725_s14 + $0x70] sm:$0xff]  ;;  %v831_v11 = vld [vmem:[%s1725_s14 + $0x68] sm:$0xff] }
  0x61   : > { %1219 = vmatpush3.msra.mxu0 %v513_v43  ;;  %1260 = vmatprep.subr.mxu1 %v635_v48  ;;  %v833_v9 = vld [vmem:[%s1725_s14 + $0x78] sm:$0xff]  ;;  %v830_v12 = vld [vmem:[%s1725_s14 + $0x60] sm:$0xff]  ;;  %v828_v14 = vld [vmem:[%s1725_s14 + $0x50] sm:$0xff] }
  0x62   : > { %1220 = vmatprep.subr.mxu0 %v512_v45  ;;  %1261 = vmatpush3.msra.mxu1 %v635_v48  ;;  %v829_v13 = vld [vmem:[%s1725_s14 + $0x58] sm:$0xff]  ;;  %v827_v15 = vld [vmem:[%s1725_s14 + $0x48] sm:$0xff]  ;;  %v826_v16 = vld [vmem:[%s1725_s14 + $0x40] sm:$0xff] }
  0x63   : > { %1221 = vmatpush3.msra.mxu0 %v512_v45  ;;  %1262 = vmatprep.subr.mxu1 %v634_v50  ;;  %v825_v17 = vld [vmem:[%s1725_s14 + $0x38] sm:$0xff]  ;;  %v824_v18 = vld [vmem:[%s1725_s14 + $0x30] sm:$0xff]  ;;  %v823_v19 = vld [vmem:[%s1725_s14 + $0x28] sm:$0xff] }
  0x64   : > { %1222 = vmatprep.subr.mxu0 %v511_v47  ;;  %1263 = vmatpush3.msra.mxu1 %v634_v50  ;;  %v822_v20 = vld [vmem:[%s1725_s14 + $0x20] sm:$0xff]  ;;  %v821_v21 = vld [vmem:[%s1725_s14 + $0x18] sm:$0xff]  ;;  %v820_v22 = vld [vmem:[%s1725_s14 + $0x10] sm:$0xff] }
  0x65   : > { %1223 = vmatpush3.msra.mxu0 %v511_v47  ;;  %1264 = vmatprep.subr.mxu1 %v633_v52  ;;  %v819_v23 = vld [vmem:[%s1725_s14 + $0x8] sm:$0xff]  ;;  %v818_v24 = vld [vmem:[%s1725_s14] sm:$0xff] }
  0x66   : > { %1224 = vmatprep.subr.mxu0 %v510_v49  ;;  %1265 = vmatpush3.msra.mxu1 %v633_v52 }
  0x67   : > { %1225 = vmatpush3.msra.mxu0 %v510_v49  ;;  %1266 = vmatprep.subr.mxu1 %v632_v54 }
  0x68   : > { %1226 = vmatprep.subr.mxu0 %v509_v51  ;;  %1267 = vmatpush3.msra.mxu1 %v632_v54 }
  0x69   : > { %1227 = vmatpush3.msra.mxu0 %v509_v51  ;;  %1268 = vmatprep.subr.mxu1 %v631_v56 }
  0x6a   : > { %1228 = vmatprep.subr.mxu0 %v508_v53  ;;  %1269 = vmatpush3.msra.mxu1 %v631_v56 }
  0x6b   : > { %1229 = vmatpush3.msra.mxu0 %v508_v53  ;;  %1270 = vmatprep.subr.mxu1 %v630_v58 }
  0x6c   : > { %1230 = vmatprep.subr.mxu0 %v507_v55  ;;  %1271 = vmatpush3.msra.mxu1 %v630_v58 }
  0x6d   : > { %1231 = vmatpush3.msra.mxu0 %v507_v55  ;;  %1272 = vmatprep.subr.mxu1 %v629_v60 }
  0x6e   : > { %1232 = vmatprep.subr.mxu0 %v506_v57  ;;  %1273 = vmatpush3.msra.mxu1 %v629_v60 }
  0x6f   : > { %1233 = vmatpush3.msra.mxu0 %v506_v57  ;;  %1274 = vmatprep.subr.mxu1 %v628_v62 }
  0x70   : > { %1234 = vmatprep.subr.mxu0 %v505_v59  ;;  %1275 = vmatpush3.msra.mxu1 %v628_v62 }
  0x71   : > { %1235 = vmatpush3.msra.mxu0 %v505_v59  ;;  %1276 = vmatprep.subr.mxu1 %v627_v0 }
  0x72   : > { %1236 = vmatprep.subr.mxu0 %v504_v61  ;;  %1277 = vmatpush3.msra.mxu1 %v627_v0 }
  0x73   : > { %1237 = vmatpush3.msra.mxu0 %v504_v61  ;;  %1278 = vmatprep.subr.mxu1 %v626_v2 }
  0x74   : > { %1239 = vmatmul.mubr.f32.vlgmr.msra.gmra.mxu0 %v497_v63  ;;  %1282 = vmatprep.mubr.f32.mxu1 %v1748_v37 }
  0x75   : > { %1241 = vmatprep.mubr.f32.mxu0 %v498_v1  ;;  %1279 = vmatpush3.msra.mxu1 %v626_v2 }
  0x76   : > { %1280 = vmatprep.subr.mxu1 %v625_v4  ;;  %1294 = vmatprep.subr.mxu0 %v833_v9 }
  0x77   : > { %1281 = vmatpush3.msra.mxu1 %v625_v4  ;;  %1295 = vmatpush3.msra.mxu0 %v833_v9 }
  0x78   : > { %1242 = vmatmul.mubr.f32.gmra.mxu0 %v499_v3  ;;  %1283 = vmatmul.mubr.f32.vlgmr.msra.gmra.mxu1 %v497_v63 }
  0x79   : > { %1244 = vmatprep.mubr.f32.mxu0 %v500_v5  ;;  %1285 = vmatprep.mubr.f32.mxu1 %v498_v1 }
  0x7a   : > { %1338 = vmatprep.subr.mxu1 %v833_v9  ;;  %1296 = vmatprep.subr.mxu0 %v832_v10 }
  0x7b   : > { %1354 = vmatpush3.msra.mxu1 %v833_v9  ;;  %1297 = vmatpush3.msra.mxu0 %v832_v10 }
  0x7c   : > { %1245 = vmatmul.mubr.f32.gmra.mxu0 %v501_v6  ;;  %1286 = vmatmul.mubr.f32.gmra.mxu1 %v499_v3 }
  0x7d   : > { %1247 = vmatprep.mubr.f32.mxu0 %v502_v7  ;;  %1288 = vmatprep.mubr.f32.mxu1 %v500_v5 }
  0x7e   : > { %1339 = vmatprep.subr.mxu1 %v832_v10  ;;  %1298 = vmatprep.subr.mxu0 %v831_v11 }
  0x7f   : > { %1355 = vmatpush3.msra.mxu1 %v832_v10  ;;  %1299 = vmatpush3.msra.mxu0 %v831_v11 }
  0x80   : > { %1248 = vmatmul.mubr.f32.gmra.mxu0 %v503_v8  ;;  %1289 = vmatmul.mubr.f32.gmra.mxu1 %v501_v6 }
  0x81   : > { %1291 = vmatprep.mubr.f32.mxu1 %v502_v7  ;;  %1340 = vmatprep.subr.mxu1 %v831_v11 }
  0x82   : > { %1356 = vmatpush3.msra.mxu1 %v831_v11  ;;  %1300 = vmatprep.subr.mxu0 %v830_v12 }
  0x83   : > { %1341 = vmatprep.subr.mxu1 %v830_v12  ;;  %1301 = vmatpush3.msra.mxu0 %v830_v12 }
  0x84   : > { %1292 = vmatmul.mubr.f32.gmra.mxu1 %v503_v8  ;;  %1302 = vmatprep.subr.mxu0 %v829_v13 }
  0x85   : > { %1357 = vmatpush3.msra.mxu1 %v830_v12  ;;  %1303 = vmatpush3.msra.mxu0 %v829_v13 }
  0x86   : > { %1342 = vmatprep.subr.mxu1 %v829_v13  ;;  %1304 = vmatprep.subr.mxu0 %v828_v14 }
  0x87   : > { %1358 = vmatpush3.msra.mxu1 %v829_v13  ;;  %1305 = vmatpush3.msra.mxu0 %v828_v14 }
  0x88   : > { %1343 = vmatprep.subr.mxu1 %v828_v14  ;;  %1306 = vmatprep.subr.mxu0 %v827_v15 }
  0x89   : > { %1359 = vmatpush3.msra.mxu1 %v828_v14  ;;  %1307 = vmatpush3.msra.mxu0 %v827_v15 }
  0x8a   : > { %1344 = vmatprep.subr.mxu1 %v827_v15  ;;  %1308 = vmatprep.subr.mxu0 %v826_v16 }
  0x8b   : > { %1360 = vmatpush3.msra.mxu1 %v827_v15  ;;  %1309 = vmatpush3.msra.mxu0 %v826_v16 }
  0x8c   : > { %1345 = vmatprep.subr.mxu1 %v826_v16  ;;  %1310 = vmatprep.subr.mxu0 %v825_v17 }
  0x8d   : > { %1361 = vmatpush3.msra.mxu1 %v826_v16  ;;  %1311 = vmatpush3.msra.mxu0 %v825_v17 }
  0x8e   : > { %1346 = vmatprep.subr.mxu1 %v825_v17  ;;  %1312 = vmatprep.subr.mxu0 %v824_v18 }
  0x8f   : > { %1362 = vmatpush3.msra.mxu1 %v825_v17  ;;  %1313 = vmatpush3.msra.mxu0 %v824_v18 }
  0x90   : > { %1347 = vmatprep.subr.mxu1 %v824_v18  ;;  %1314 = vmatprep.subr.mxu0 %v823_v19 }
  0x91   : > { %1363 = vmatpush3.msra.mxu1 %v824_v18  ;;  %1315 = vmatpush3.msra.mxu0 %v823_v19 }
  0x92   : > { %1348 = vmatprep.subr.mxu1 %v823_v19  ;;  %1316 = vmatprep.subr.mxu0 %v822_v20 }
  0x93   : > { %1364 = vmatpush3.msra.mxu1 %v823_v19  ;;  %1317 = vmatpush3.msra.mxu0 %v822_v20 }
  0x94   : > { %1349 = vmatprep.subr.mxu1 %v822_v20  ;;  %1318 = vmatprep.subr.mxu0 %v821_v21 }
  0x95   : > { %1365 = vmatpush3.msra.mxu1 %v822_v20  ;;  %1319 = vmatpush3.msra.mxu0 %v821_v21 }
  0x96   : > { %1350 = vmatprep.subr.mxu1 %v821_v21  ;;  %1320 = vmatprep.subr.mxu0 %v820_v22 }
  0x97   : > { %1366 = vmatpush3.msra.mxu1 %v821_v21  ;;  %1321 = vmatpush3.msra.mxu0 %v820_v22 }
  0x98   : > { %1351 = vmatprep.subr.mxu1 %v820_v22  ;;  %1322 = vmatprep.subr.mxu0 %v819_v23 }
  0x99   : > { %1367 = vmatpush3.msra.mxu1 %v820_v22  ;;  %1323 = vmatpush3.msra.mxu0 %v819_v23 }
  0x9a   : > { %1352 = vmatprep.subr.mxu1 %v819_v23  ;;  %1324 = vmatprep.subr.mxu0 %v818_v24 }
  0x9b   : > { %1368 = vmatpush3.msra.mxu1 %v819_v23  ;;  %1325 = vmatpush3.msra.mxu0 %v818_v24 }
  0x9c   : > { %1353 = vmatprep.subr.mxu1 %v818_v24 }
  0x9d   : > { %1369 = vmatpush3.msra.mxu1 %v818_v24 }
 0x134   : > { %v1240_v25 = vpop.f32.mrf.mxu0 }
 0x135   : > { %v1123_v26 = vmul.f32 -1.442695, %v1240_v25 }
 0x136   : > { %v586_v27 = vpop.f32.mrf.mxu0 }
 0x137   : > { %1439 = vpow2.f32 %v1123_v26  ;;  %v1122_v28 = vmul.f32 -1.442695, %v586_v27 }
 0x138   : > { %v1243_v29 = vpop.f32.mrf.mxu0  ;;  %v1284_v46 = vpop.f32.mrf.mxu1 }
 0x139   : > { %1441 = vpow2.f32 %v1122_v28  ;;  %v1125_v30 = vmul.f32 -1.442695, %v1243_v29 }
 0x13a   : > { %v596_v31 = vpop.f32.mrf.mxu0  ;;  %v707_v51 = vpop.f32.mrf.mxu1 }
 0x13b   : > { %1443 = vpow2.f32 %v1125_v30  ;;  %v1124_v32 = vmul.f32 -1.442695, %v596_v31  ;;  %v813_v30 = vld [vmem:[#allocation2 + $0x10] sm:$0xff] }
 0x13c   : > { %v1246_v33 = vpop.f32.mrf.mxu0  ;;  %v1287_v56 = vpop.f32.mrf.mxu1 }
 0x13d   : > { %1445 = vpow2.f32 %v1124_v32  ;;  %v1127_v34 = vmul.f32 -1.442695, %v1246_v33 }
 0x13e   : > { %v606_v35 = vpop.f32.mrf.mxu0  ;;  %v717_v61 = vpop.f32.mrf.mxu1 }
 0x13f   : > { %1447 = vpow2.f32 %v1127_v34  ;;  %v1126_v36 = vmul.f32 -1.442695, %v606_v35 }
 0x140   : > { %v1249_v37 = vpop.f32.mrf.mxu0  ;;  %v1290_v2 = vpop.f32.mrf.mxu1 }
 0x141   : > { %1449 = vpow2.f32 %v1126_v36  ;;  %v1129_v38 = vmul.f32 -1.442695, %v1249_v37  ;;  %v815_v36 = vld [vmem:[#allocation2 + $0x20] sm:$0xff] }
 0x142   : > { %v616_v39 = vpop.f32.mrf.mxu0  ;;  %v727_v9 = vpop.f32.mrf.mxu1 }
 0x143   : > { %1451 = vpow2.f32 %v1129_v38  ;;  %v1128_v40 = vmul.f32 -1.442695, %v616_v39 }
 0x144   : > { %v1440_v41 = vpop.eup %1439  ;;  %v1293_v16 = vpop.f32.mrf.mxu1 }
 0x145   : > { %v771_v42 = vadd.f32 1.0, %v1440_v41  ;;  %1453 = vpow2.f32 %v1128_v40 }
 0x146   : > { %v1442_v43 = vpop.eup %1441  ;;  %v737_v22 = vpop.f32.mrf.mxu1 }
 0x147   : > { %1455 = vrcp.f32 %v771_v42  ;;  %v770_v44 = vadd.f32 1.0, %v1442_v43  ;;  %v817_v42 = vld [vmem:[#allocation2 + $0x38] sm:$0xff] }
 0x148   : > { %v1444_v45 = vpop.eup %1443 }
 0x149   : > { %1457 = vrcp.f32 %v770_v44  ;;  %v773_v47 = vadd.f32 1.0, %v1444_v45  ;;  %v816_v45 = vld [vmem:[#allocation2 + $0x28] sm:$0xff] }
 0x14a   : > { %v1446_v48 = vpop.eup %1445 }
 0x14b   : > { %1459 = vrcp.f32 %v773_v47  ;;  %v772_v49 = vadd.f32 1.0, %v1446_v48 }
 0x14c   : > { %v1448_v50 = vpop.eup %1447 }
 0x14d   : > { %1461 = vrcp.f32 %v772_v49  ;;  %v775_v52 = vadd.f32 1.0, %v1448_v50 }
 0x14e   : > { %v1450_v53 = vpop.eup %1449 }
 0x14f   : > { %1463 = vrcp.f32 %v775_v52  ;;  %v774_v54 = vadd.f32 1.0, %v1450_v53 }
 0x150   : > { %v1452_v55 = vpop.eup %1451 }
 0x151   : > { %1465 = vrcp.f32 %v774_v54  ;;  %v777_v57 = vadd.f32 1.0, %v1452_v55 }
 0x152   : > { %v1454_v58 = vpop.eup %1453 }
 0x153   : > { %1467 = vrcp.f32 %v777_v57  ;;  %v776_v59 = vadd.f32 1.0, %v1454_v58 }
 0x154   : > { %v1456_v60 = vpop.eup %1455 }
 0x155   : > { %1469 = vrcp.f32 %v776_v59  ;;  %v795_v63 = vmul.f32 %v1456_v60, %v1240_v25  ;;  %v811_v25 = vld [vmem:[#allocation2] sm:$0xff] }
 0x156   : > { %v1458_v62 = vpop.eup %1457 }
 0x157   : > { %v794_v0 = vmul.f32 %v1458_v62, %v586_v27  ;;  %v803_v6 = vmul.f32 %v1284_v46, %v795_v63  ;;  %v810_v27 = vld [vmem:[#allocation2 + $0x30] sm:$0xff] }
 0x158   : > { %v1460_v1 = vpop.eup %1459 }
 0x159   : > { %v802_v3 = vmul.f32 %v794_v0, %v707_v51  ;;  %v797_v5 = vmul.f32 %v1460_v1, %v1243_v29 }
 0x15a   : > { %v1462_v4 = vpop.eup %1461 }
 0x15b   : > { %v796_v7 = vmul.f32 %v1462_v4, %v596_v31  ;;  %1326 = vmatprep.mubr.f32.mxu0 %v802_v3  ;;  %v805_v13 = vmul.f32 %v1287_v56, %v797_v5 }
 0x15c   : > { %v1464_v8 = vpop.eup %1463  ;;  %1327 = vmatmul.mubr.f32.vlgmr.msra.gmra.mxu0 %v803_v6 }
 0x15d   : > { %v804_v10 = vmul.f32 %v796_v7, %v717_v61  ;;  %v799_v12 = vmul.f32 %v1464_v8, %v1246_v33  ;;  %v812_v33 = vld [vmem:[#allocation2 + $0x18] sm:$0xff] }
 0x15e   : > { %v1466_v11 = vpop.eup %1465 }
 0x15f   : > { %v798_v14 = vmul.f32 %v1466_v11, %v606_v35  ;;  %1329 = vmatprep.mubr.f32.mxu0 %v804_v10  ;;  %v807_v20 = vmul.f32 %v1290_v2, %v799_v12 }
 0x160   : > { %v1468_v15 = vpop.eup %1467  ;;  %1330 = vmatmul.mubr.f32.gmra.mxu0 %v805_v13 }
 0x161   : > { %v806_v17 = vmul.f32 %v798_v14, %v727_v9  ;;  %v801_v19 = vmul.f32 %v1468_v15, %v1249_v37 }
 0x162   : > { %v1470_v18 = vpop.eup %1469 }
 0x163   : > { %v800_v21 = vmul.f32 %v1470_v18, %v616_v39  ;;  %1332 = vmatprep.mubr.f32.mxu1 %v806_v17  ;;  %v809_v24 = vmul.f32 %v1293_v16, %v801_v19  ;;  %v814_v39 = vld [vmem:[#allocation2 + $0x8] sm:$0xff] }
 0x164   : > { %1333 = vmatmul.mubr.f32.vlgmr.msra.gmra.mxu1 %v807_v20 }
 0x165   : > { %v808_v23 = vmul.f32 %v800_v21, %v737_v22 }
 0x167   : > { %1335 = vmatprep.mubr.f32.mxu1 %v808_v23 }
 0x168   : > { %1336 = vmatmul.mubr.f32.gmra.mxu1 %v809_v24 }
 0x21c   : > { %v1328_v26 = vpop.f32.mrf.mxu0 }
 0x21d   : > { %v940_v28 = vadd.f32 %v1328_v26, %v811_v25 }
 0x21e   : > { %v900_v29 = vpop.f32.mrf.mxu0 }
 0x21f   : > { %948 = vst [vmem:[#allocation2] sm:$0xff] %v940_v28  ;;  %v939_v31 = vadd.f32 %v900_v29, %v810_v27 }
 0x220   : > { %v1331_v32 = vpop.f32.mrf.mxu0 }
 0x221   : > { %947 = vst [vmem:[#allocation2 + $0x30] sm:$0xff] %v939_v31  ;;  %v942_v34 = vadd.f32 %v1331_v32, %v813_v30 }
 0x222   : > { %v910_v35 = vpop.f32.mrf.mxu0 }
 0x223   : > { %950 = vst [vmem:[#allocation2 + $0x10] sm:$0xff] %v942_v34  ;;  %v941_v37 = vadd.f32 %v910_v35, %v812_v33 }
 0x224   : > { %v1334_v38 = vpop.f32.mrf.mxu1 }
 0x225   : > { %949 = vst [vmem:[#allocation2 + $0x18] sm:$0xff] %v941_v37  ;;  %v944_v40 = vadd.f32 %v1334_v38, %v815_v36 }
 0x226   : > { %v920_v41 = vpop.f32.mrf.mxu1 }
 0x227   : > { %952 = vst [vmem:[#allocation2 + $0x20] sm:$0xff] %v944_v40  ;;  %v943_v43 = vadd.f32 %v920_v41, %v814_v39 }
 0x228   : > { %v1337_v44 = vpop.f32.mrf.mxu1 }
 0x229   : > { %951 = vst [vmem:[#allocation2 + $0x8] sm:$0xff] %v943_v43  ;;  %v946_v46 = vadd.f32 %v1337_v44, %v817_v42  ;;  %958 = sbr.rel (%p1130_p8) target bundleno = 566 (0x236), region = 124 }
 0x22a   : > { %v930_v47 = vpop.f32.mrf.mxu1 }
 0x22b   : > { %954 = vst [vmem:[#allocation2 + $0x38] sm:$0xff] %v946_v46  ;;  %v945_v48 = vadd.f32 %v930_v47, %v816_v45 }
 0x22d   : > { %953 = vst [vmem:[#allocation2 + $0x28] sm:$0xff] %v945_v48 }
 0x22e   : > { %v959_v49 = vld [vmem:[#allocation2 + $0x30] sm:$0xff]  ;;  %v960_v50 = vld [vmem:[#allocation2] sm:$0xff]  ;;  %v961_v51 = vld [vmem:[#allocation2 + $0x18] sm:$0xff] }
 0x22f   : > { %967 = vst [vmem:[%s1740_s27] sm:$0xff] %v959_v49  ;;  %968 = vst [vmem:[%s1740_s27 + $0x8] sm:$0xff] %v960_v50  ;;  %v962_v52 = vld [vmem:[#allocation2 + $0x10] sm:$0xff]  ;;  %v964_v54 = vld [vmem:[#allocation2 + $0x20] sm:$0xff] }
 0x230   : > { %969 = vst [vmem:[%s1740_s27 + $0x10] sm:$0xff] %v961_v51  ;;  %v963_v53 = vld [vmem:[#allocation2 + $0x8] sm:$0xff]  ;;  %970 = vst [vmem:[%s1740_s27 + $0x18] sm:$0xff] %v962_v52 }
 0x231   : > { %971 = vst [vmem:[%s1740_s27 + $0x20] sm:$0xff] %v963_v53  ;;  %972 = vst [vmem:[%s1740_s27 + $0x28] sm:$0xff] %v964_v54 }
 0x232   : > { %v966_v56 = vld [vmem:[#allocation2 + $0x38] sm:$0xff] }
 0x233   : > { %974 = vst [vmem:[%s1740_s27 + $0x38] sm:$0xff] %v966_v56 }
 0x234   : > { %v965_v55 = vld [vmem:[#allocation2 + $0x28] sm:$0xff] }
 0x235   : > { %973 = vst [vmem:[%s1740_s27 + $0x30] sm:$0xff] %v965_v55 }
 0x236 PF: > { %s17_s22 = sadd.s32 1, %s1563_s22   ;;  %s1843_s15 = smov %s1539_s16 }
 0x237   : > { %p14_p9 = scmp.ge.s32.totalorder %s17_s22, 6   ;;  %s1844_s16 = smov %s1543_s17 }
 0x238   : > { %s1845_s17 = smov %s1652_s29  ;;  %s1846_s18 = smov %s1555_s20 }
 0x239   : > { %s1847_s19 = smov %s1559_s21  ;;  %s1848_s20 = smov %s1851_s24 }
 0x23a   : > { %s1849_s21 = smov %s1855_s25  ;;  %16 = sbr.rel (!%p14_p9) target bundleno = 5 (0x5), region = 179 }
 0x23f   :  { %997 = vsyncpa [#allocation6], 1 }
 0x240   :  { %999 = vsyncpa [#allocation6 + $0x1], 1 }

</bundles_post_ra>
